<compile_context>
chip_gen: v7x
topology: tpu7x:2x2x1
jax: 0.10.0
libtpu: 0.0.40
codegen_flags: <defaults>
</compile_context>

<pallas_src>
import math

import jax
import jax.numpy as jnp
from jax.experimental import pallas as pl
from jax.experimental.pallas import tpu as pltpu


# ---------------------------------------------------------------------------
# Buffer construction (glue, plain JAX — mirrors the PyTorch __init__)
# ---------------------------------------------------------------------------
def make_positional_encoding_table(d_model: int, max_len: int = 100) -> jnp.ndarray:
    """Builds the (max_len, d_model) sin/cos table exactly like the PyTorch __init__."""
    assert d_model % 2 == 0, "PositionalEncoding requires an even d_model"
    pos = jnp.arange(0, max_len, dtype=jnp.float32)[:, None]                    # (max_len, 1)
    div_term = jnp.exp(
        jnp.arange(0, d_model, 2, dtype=jnp.float32) * -(math.log(10000.0) / d_model)
    )                                                                            # (d_model//2,)
    pe = jnp.zeros((max_len, d_model), dtype=jnp.float32)
    pe = pe.at[:, 0::2].set(jnp.sin(pos * div_term))
    pe = pe.at[:, 1::2].set(jnp.cos(pos * div_term))
    return pe


# ---------------------------------------------------------------------------
# Pallas kernel: lane-dense add; pe broadcast across batch done in-kernel
# ---------------------------------------------------------------------------
def _pe_add_kernel(x_ref, pe_ref, o_ref):
    # x_ref/o_ref: (ts, tc) tiles of the flattened (S, B*D) view.
    # pe_ref:      (ts, D) tile, resident across the inner column axis.
    reps = x_ref.shape[-1] // pe_ref.shape[-1]   # static: tc is a multiple of D
    pe_blk = pe_ref[...]
    if reps > 1:
        # Lane-axis repeat (cheap concat/broadcast on XLU/VPU slots; the add is
        # HBM-bound so this is free filler).
        pe_blk = jnp.tile(pe_blk, (1, reps))
    o_ref[...] = x_ref[...] + pe_blk


def _choose_tiles(S, C, D, itemsize, target_tile_bytes, max_lanes=4096):
    """Pick (ts, tc).

    tc: full C when it fits in a reasonable row width, else a multiple of
        lcm(D, 128) so (a) lane-aligned unmasked stores, (b) each column block
        covers whole copies of pe's D columns (pe block index stays (i, 0)).
    ts: multiple of the dtype's packed-sublane count (8 f32 / 16 bf16 / 32 int8)
        or the full seq dim, sized so one x tile ~= target_tile_bytes.
    """
    sub = max(8, 32 // itemsize)          # packed sublanes per vreg for this dtype
    if C <= max_lanes:
        tc = C
    else:
        base = math.lcm(D, 128)
        if base > max_lanes:
            tc = C                         # can't tile columns cleanly: keep full rows
        else:
            tc = (max_lanes // base) * base
    rows = max(sub, target_tile_bytes // max(1, tc * itemsize))
    ts = (rows // sub) * sub
    if ts >= S:
        ts = S                             # block dim == full array dim: exempt from 8-rule
    return int(ts), int(tc)


def positional_encoding_forward(
    x: jnp.ndarray,
    pe: jnp.ndarray,
    *,
    target_tile_bytes: int = 4 << 20,        # ~4 MiB x-tile -> ~16-24 MiB working set
    vmem_limit_bytes: int = 32 * 1024 * 1024,  # safe on v5e/v6e/v7x
    force_pallas: bool = False,
    max_lanes: int = 4096,
    small_problem_bytes: int = 256 * 1024,
):
    """x: (S, B, D); pe: (max_len, D). Returns x + pe[:S] broadcast over B."""
    S, B, D = x.shape
    assert S <= pe.shape[0], "sequence length exceeds positional-encoding max_len"
    assert pe.shape[1] == D, "pe d_model mismatch"
    C = B * D
    itemsize = jnp.dtype(x.dtype).itemsize

    # Small-problem fast path: at a few KiB the pallas_call is 100% fixed overhead;
    # let XLA fuse the add into surrounding ops instead.
    if not force_pallas and S * C * itemsize <= small_problem_bytes:
        return x + pe[:S][:, None, :].astype(x.dtype)

    # Free view: collapse (S, B, D) -> (S, B*D) so the kernel last dim is lane-dense.
    x2 = x.reshape(S, C)
    # Only the (S, D) slice is streamed (cast is negligible); NO batch broadcast in HBM.
    pe_s = pe[:S].astype(x.dtype)

    ts, tc = _choose_tiles(S, C, D, itemsize, target_tile_bytes, max_lanes)
    # Column axis innermost: pe's block index (i, 0) is constant across it, so its
    # tile stays resident in VMEM for the whole row stripe (no re-DMA per step).
    grid = (pl.cdiv(S, ts), pl.cdiv(C, tc))

    out2 = pl.pallas_call(
        _pe_add_kernel,
        out_shape=jax.ShapeDtypeStruct((S, C), x.dtype),
        grid_spec=pltpu.PrefetchScalarGridSpec(
            num_scalar_prefetch=0,
            grid=grid,
            in_specs=[
                pl.BlockSpec((ts, tc), lambda i, j: (i, j)),   # x
                pl.BlockSpec((ts, D), lambda i, j: (i, 0)),    # pe (resident over j)
            ],
            out_specs=pl.BlockSpec((ts, tc), lambda i, j: (i, j)),
        ),
        compiler_params=pltpu.CompilerParams(
            # Elementwise, no reduction: both axes parallel so the pipeline
            # double-buffers.  On v7x, if a profile shows one TensorCore idle,
            # switch the outer (row) axis to pltpu.CORE_PARALLEL.
            dimension_semantics=("parallel", "parallel"),
            vmem_limit_bytes=vmem_limit_bytes,
        ),
    )(x2, pe_s)

    return out2.reshape(S, B, D)


# ---------------------------------------------------------------------------
# Reference (pure JAX) for correctness check
# ---------------------------------------------------------------------------
def positional_encoding_ref(x, pe):
    S = x.shape[0]
    return x + pe[:S][:, None, :]


if __name__ == "__main__":
    MAX_LEN = 100
    key = jax.random.PRNGKey(0)

    # 1) Module-default small shape: x = (seq_len=8, batch=2, d_model=32)
    S, B, D = 8, 2, 32
    pe = make_positional_encoding_table(D, max_len=MAX_LEN)
    x = jax.random.normal(key, (S, B, D), dtype=jnp.float32)
    ref = positional_encoding_ref(x, pe)

    # (a) default path: small-problem fast path (plain fused XLA add)
    out_fast = jax.block_until_ready(positional_encoding_forward(x, pe))
    assert out_fast.shape == (S, B, D)
    assert jnp.allclose(out_fast, ref, atol=1e-6, rtol=1e-6), "mismatch (fast path)"

    # (b) force the Pallas kernel at the same shape (single (1,1) grid step,
    #     exercises the in-kernel batch broadcast, reps=2)
    out_pallas = jax.block_until_ready(positional_encoding_forward(x, pe, force_pallas=True))
    assert jnp.allclose(out_pallas, ref, atol=1e-6, rtol=1e-6), "mismatch (pallas, toy shape)"

    # (c) multi-row grid with a non-divisible seq length (masked remainder rows)
    S2, B2, D2 = 20, 2, 64
    pe2 = make_positional_encoding_table(D2, max_len=MAX_LEN)
    x2 = jax.random.normal(jax.random.PRNGKey(0), (S2, B2, D2), dtype=jnp.float32)
    out2 = jax.block_until_ready(
        positional_encoding_forward(x2, pe2, force_pallas=True, target_tile_bytes=4 * 1024)
    )
    assert out2.shape == (S2, B2, D2)
    assert jnp.allclose(out2, positional_encoding_ref(x2, pe2), atol=1e-6, rtol=1e-6), \
        "mismatch (pallas, row-tiled path)"

    # (d) column-tiled path: tc = lcm(D,128)-aligned < C; pe block (i, 0) stays
    #     resident across the inner column axis; in-kernel reps=2
    S3, B3, D3 = 16, 4, 64
    pe3 = make_positional_encoding_table(D3, max_len=MAX_LEN)
    x3 = jax.random.normal(jax.random.PRNGKey(1), (S3, B3, D3), dtype=jnp.float32)
    out3 = jax.block_until_ready(
        positional_encoding_forward(
            x3, pe3, force_pallas=True, target_tile_bytes=4 * 1024, max_lanes=128
        )
    )
    assert out3.shape == (S3, B3, D3)
    assert jnp.allclose(out3, positional_encoding_ref(x3, pe3), atol=1e-6, rtol=1e-6), \
        "mismatch (pallas, column-tiled path)"

    print("KERNEL_OK")
</pallas_src>

<mosaic_0001>
module attributes {stable_mosaic.version = 11 : i64} {
  func.func @_pe_add_kernel(%arg0: i32, %arg1: i32, %arg2: memref<8x64xf32, #tpu.memory_space<vmem>>, %arg3: memref<8x32xf32, #tpu.memory_space<vmem>>, %arg4: memref<8x64xf32, #tpu.memory_space<vmem>>) attributes {dimension_semantics = [#tpu.dimension_semantics<parallel>, #tpu.dimension_semantics<parallel>], iteration_bounds = array<i64: 1, 1>, scalar_prefetch = 0 : i64, scratch_operands = 0 : i64, tpu.core_type = #tpu.core_type<tc>, window_params = [{transform_indices = @transform_0, window_bounds = array<i64: 8, 64>}, {transform_indices = @transform_1, window_bounds = array<i64: 8, 32>}, {transform_indices = @transform_2, window_bounds = array<i64: 8, 64>}]} {
    %c0 = arith.constant 0 : index
    %c0_0 = arith.constant 0 : index
    %0 = vector.load %arg3[%c0, %c0_0] : memref<8x32xf32, #tpu.memory_space<vmem>>, vector<8x32xf32>
    %1 = tpu.concatenate %0, %0 in 1 : vector<8x32xf32>, vector<8x32xf32> -> vector<8x64xf32>
    %c0_1 = arith.constant 0 : index
    %c0_2 = arith.constant 0 : index
    %2 = vector.load %arg2[%c0_1, %c0_2] : memref<8x64xf32, #tpu.memory_space<vmem>>, vector<8x64xf32>
    %3 = arith.addf %2, %1 : vector<8x64xf32>
    %c0_3 = arith.constant 0 : index
    %c0_4 = arith.constant 0 : index
    %4 = vector.load %arg4[%c0_3, %c0_4] : memref<8x64xf32, #tpu.memory_space<vmem>>, vector<8x64xf32>
    tpu.vector_store %arg4[%c0_3, %c0_4], %3 {strides = array<i32>} : memref<8x64xf32, #tpu.memory_space<vmem>>, vector<8x64xf32>,
    return
  }
  func.func @transform_0(%arg0: i32, %arg1: i32) -> (i32, i32) {
    %c0_i32 = arith.constant 0 : i32
    return %arg0, %arg1 : i32, i32
  }
  func.func @transform_1(%arg0: i32, %arg1: i32) -> (i32, i32) {
    %c0_i32 = arith.constant 0 : i32
    %c0_i32_0 = arith.constant 0 : i32
    return %arg0, %c0_i32 : i32, i32
  }
  func.func @transform_2(%arg0: i32, %arg1: i32) -> (i32, i32) {
    %c0_i32 = arith.constant 0 : i32
    return %arg0, %arg1 : i32, i32
  }
}

</mosaic_0001>

<bundles_post_ra>
// kernel: tpu_custom_call.1
= control target key start
LH: loop header
LB: loop body
LE: loop exit
PB: predicated region body
PF: predicated region fallthrough
CT: control target
= control target key end

     0   :  { %7 = vsyncpa [#allocation3], 0  ;;  %s194_s0 = inlined_call_operand.hbm [shape: f32[8,64], index: 0, kind: input, shape index: {}]   ;;  %s195_s1 = inlined_call_operand.hbm [shape: f32[8,32], index: 1, kind: input, shape index: {}]   ;;  %s196_s2 = inlined_call_operand.hbm [shape: f32[8,64], index: 2, kind: output, shape index: {}]  }
   0x1   :  { %8 = vsyncpa [#allocation6], 0 }
   0x2   :  { %9 = vsyncpa [#allocation4], 0  ;;  %s139_s9 = smov [#allocation2]   ;;  %s140_s11 = smov [#allocation5]  }
   0x3   :  { %s16_s10 = sshll.u32 %s139_s9, 4  ;;  %s26_s12 = sshll.u32 %s140_s11, 4  ;;  %s17_s10 = int_to_ptr.vmem [resolvable:$true] %s16_s10  ;;  %s27_s12 = int_to_ptr.vmem [resolvable:$true] %s26_s12 }
   0x4   :  { %s67_s15 = scalar_lea.hbm %s194_s0, 128 }
   0x5   :  { %p68_p0 = scmp.ne.s32.totalorder %s194_s0, %s67_s15  ;;  %p71_p1 = scmp.lt.u32.totalorder %s67_s15, %s194_s0 }
   0x7   :  { %p73_p2 = pnand %p71_p1, %p68_p0 }
   0x9   :  { %76 = shalt.err (!%p73_p2)
}
   0xa   :  { %s77_s20 = scalar_lea.vmem %s17_s10, 128  ;;  %p82_p4 = scmp.lt.s32.totalorder %s17_s10, %s17_s10 }
   0xb   :  { %p78_p3 = scmp.ne.s32.totalorder %s17_s10, %s77_s20  ;;  %p83_p5 = scmp.lt.s32.totalorder %s77_s20, %s77_s20 }
   0xd   :  { %p84_p6 = por %p83_p5, %p82_p4 }
   0xf   :  { %p85_p7 = pnand %p84_p6, %p78_p3 }
  0x11   :  { %88 = shalt.err (!%p85_p7)
}
  0x12   :  { %19 = dma.hbm_to_vmem [thread:$0]  %s194_s0, 128, %s17_s10, [#allocation3]  }
  0x13   :  { %s89_s25 = scalar_lea.hbm %s195_s1, 128 }
  0x14   :  { %p90_p8 = scmp.ne.s32.totalorder %s195_s1, %s89_s25  ;;  %p93_p9 = scmp.lt.u32.totalorder %s89_s25, %s195_s1 }
  0x16   :  { %p95_p10 = pnand %p93_p9, %p90_p8 }
  0x18   :  { %98 = shalt.err (!%p95_p10)
}
  0x19   :  { %s99_s30 = scalar_lea.vmem %s27_s12, 128  ;;  %p104_p12 = scmp.lt.s32.totalorder %s27_s12, %s27_s12 }
  0x1a   :  { %p100_p11 = scmp.ne.s32.totalorder %s27_s12, %s99_s30  ;;  %p105_p13 = scmp.lt.s32.totalorder %s99_s30, %s99_s30 }
  0x1c   :  { %p106_p0 = por %p105_p13, %p104_p12 }
  0x1e   :  { %p107_p1 = pnand %p106_p0, %p100_p11 }
  0x20   :  { %110 = shalt.err (!%p107_p1)
}
  0x21   :  { %29 = dma.hbm_to_vmem [thread:$0]  %s195_s1, 128, %s27_s12, [#allocation6]  }
  0x22   :  { %133 = dma.done.wait [#allocation3], 128  }
  0x23   :  { %134 = vsyncadd [#allocation3], 4294967168 }
  0x24   :  { %135 = dma.done.wait [#allocation6], 128  }
  0x25   :  { %136 = vsyncadd [#allocation6], 4294967168  ;;  %v36_v0 = vld [vmem:[#allocation5] sm:$0xff]  ;;  %s141_s4 = smov 32   ;;  %vm41_vm0 = vcmask 261120   ;;  %v43_v1 = vld [vmem:[#allocation2] sm:$0xff] }
  0x26   :  { %38 = vrot.lane.b32.xlu0 %v36_v0, %s141_s4  ;;  %s142_s5 = smov [#allocation7]   ;;  %vm45_vm1 = vcmask 523264  }
  0x27   :  { %s53_s6 = sshll.u32 %s142_s5, 4  ;;  %s54_s6 = int_to_ptr.vmem [resolvable:$true] %s53_s6 }
  0x28   :  { %s111_s7 = scalar_lea.vmem %s54_s6, 128  ;;  %p116_p3 = scmp.lt.s32.totalorder %s54_s6, %s54_s6 }
  0x29   :  { %p112_p2 = scmp.ne.s32.totalorder %s54_s6, %s111_s7  ;;  %p117_p4 = scmp.lt.s32.totalorder %s111_s7, %s111_s7 }
  0x2b   :  { %p118_p5 = por %p117_p4, %p116_p3 }
  0x2d   :  { %p119_p6 = pnand %p118_p5, %p112_p2 }
  0x98   :  { %v39_v2 = vpop.permute.xlu0 %38 }
  0x99   :  { %v42_v3 = vsel %vm41_vm0, %v36_v0, %v39_v2 }
  0x9a   :  { %v44_v4 = vadd.f32 %v43_v1, %v42_v3 }
  0x9c   :  { %46 = vst.msk [vmem:[#allocation7] sm:$0xff] %vm45_vm1, %v44_v4 }
  0x9d   :  { %122 = shalt.err (!%p119_p6)
}
  0x9e   :  { %s123_s9 = scalar_lea.hbm %s196_s2, 128 }
  0x9f   :  { %p124_p7 = scmp.ne.s32.totalorder %s196_s2, %s123_s9  ;;  %p127_p8 = scmp.lt.u32.totalorder %s123_s9, %s196_s2 }
  0xa1   :  { %p129_p9 = pnand %p127_p8, %p124_p7 }
  0xa3   :  { %132 = shalt.err (!%p129_p9)
}
  0xa4   :  { %56 = dma.vmem_to_hbm [thread:$0]  %s54_s6, 128, %s196_s2, [#allocation4]  }
  0xa5   :  { %137 = dma.done.wait [#allocation4], 128  }
  0xa6   :  { %138 = vsyncadd [#allocation4], 4294967168 }
  0xa7   :  { %60 = vsyncpa [#allocation3], 1 }
  0xa8   :  { %61 = vsyncpa [#allocation6], 1 }
  0xa9   :  { %62 = vsyncpa [#allocation4], 1 }

</bundles_post_ra>
